<compile_context>
chip_gen: v5e
topology: v5e:2x2
jax: 0.10.0
libtpu: 0.0.40
codegen_flags: <defaults>
</compile_context>

<pallas_src>
import jax
import jax.numpy as jnp
from jax.experimental import pallas as pl
from jax.experimental.pallas import tpu as pltpu

_SUBLANE = 8                      # batch tiles are multiples of the sublane dim
_MAX_BATCH_TILE = 1024            # per-step overhead amortized well past 512
_VMEM_BUDGET = 24 * 1024 * 1024   # target working set (safe on all gens)
_VMEM_LIMIT = 48 * 1024 * 1024    # explicit scoped-VMEM limit (< v7x 64 MiB)


def _round_up(n, m):
    return ((n + m - 1) // m) * m


def _cdiv(a, b):
    return -(-a // b)


# ---------------------------------------------------------------------------
# Kernels
# ---------------------------------------------------------------------------

def _fused_mlp_kernel(x_ref, w1_ref, b1_ref, w2_ref, b2_ref, o_ref):
    # Layer 1: bf16 operands on the MXU, f32 accumulation + f32 epilogue.
    h = jnp.dot(x_ref[...].astype(jnp.bfloat16), w1_ref[...],
                preferred_element_type=jnp.float32)
    h = jnp.maximum(h + b1_ref[...], 0.0)
    # Layer 2 consumes h straight from on-chip storage (no HBM round trip).
    out = jnp.dot(h.astype(jnp.bfloat16), w2_ref[...],
                  preferred_element_type=jnp.float32)
    out = jnp.maximum(out + b2_ref[...], 0.0)
    o_ref[...] = out.astype(o_ref.dtype)


def _dense_relu_kernel(x_ref, w_ref, b_ref, o_ref):
    acc = jnp.dot(x_ref[...].astype(jnp.bfloat16), w_ref[...],
                  preferred_element_type=jnp.float32)
    o_ref[...] = jnp.maximum(acc + b_ref[...], 0.0).astype(o_ref.dtype)


# ---------------------------------------------------------------------------
# pallas_call wrappers
# ---------------------------------------------------------------------------

def _fused_mlp(x, w1, b1, w2, b2, *, batch_tile):
    batch, d_in = x.shape
    d_h = w1.shape[1]
    d_out = w2.shape[1]
    grid = (_cdiv(batch, batch_tile),)
    flops = 2 * batch * d_in * d_h + 2 * batch * d_h * d_out
    bytes_accessed = (x.size * 4 + w1.size * 2 + b1.size * 4
                      + w2.size * 2 + b2.size * 4 + batch * d_out * 4)
    return pl.pallas_call(
        _fused_mlp_kernel,
        out_shape=jax.ShapeDtypeStruct((batch, d_out), jnp.float32),
        grid_spec=pltpu.PrefetchScalarGridSpec(
            num_scalar_prefetch=0,
            grid=grid,
            in_specs=[
                pl.BlockSpec((batch_tile, d_in), lambda i: (i, 0)),  # x tile
                pl.BlockSpec((d_in, d_h), lambda i: (0, 0)),         # w1 resident
                pl.BlockSpec((1, d_h), lambda i: (0, 0)),            # b1 resident
                pl.BlockSpec((d_h, d_out), lambda i: (0, 0)),        # w2 resident
                pl.BlockSpec((1, d_out), lambda i: (0, 0)),          # b2 resident
            ],
            out_specs=pl.BlockSpec((batch_tile, d_out), lambda i: (i, 0)),
        ),
        compiler_params=pltpu.CompilerParams(
            dimension_semantics=("parallel",),
            vmem_limit_bytes=_VMEM_LIMIT),
        cost_estimate=pl.CostEstimate(flops=flops, transcendentals=0,
                                      bytes_accessed=bytes_accessed),
    )(x, w1, b1, w2, b2)


def _dense_relu(x, w, b, *, batch_tile):
    batch, d_in = x.shape
    d_out = w.shape[1]
    grid = (_cdiv(batch, batch_tile),)
    flops = 2 * batch * d_in * d_out
    bytes_accessed = x.size * 4 + w.size * 2 + b.size * 4 + batch * d_out * 4
    return pl.pallas_call(
        _dense_relu_kernel,
        out_shape=jax.ShapeDtypeStruct((batch, d_out), jnp.float32),
        grid_spec=pltpu.PrefetchScalarGridSpec(
            num_scalar_prefetch=0,
            grid=grid,
            in_specs=[
                pl.BlockSpec((batch_tile, d_in), lambda i: (i, 0)),
                pl.BlockSpec((d_in, d_out), lambda i: (0, 0)),
                pl.BlockSpec((1, d_out), lambda i: (0, 0)),
            ],
            out_specs=pl.BlockSpec((batch_tile, d_out), lambda i: (i, 0)),
        ),
        compiler_params=pltpu.CompilerParams(
            dimension_semantics=("parallel",),
            vmem_limit_bytes=_VMEM_LIMIT),
        cost_estimate=pl.CostEstimate(flops=flops, transcendentals=0,
                                      bytes_accessed=bytes_accessed),
    )(x, w, b)


# ---------------------------------------------------------------------------
# Module
# ---------------------------------------------------------------------------

class ReLUDenseLayer:
    """JAX/Pallas port of the PyTorch ReLUDenseLayer.

    Weights are stored transposed vs PyTorch ((in, out)) in bfloat16; biases
    stay f32 and are added in the f32 epilogue. No per-call padding/slicing.
    """

    def __init__(self, inp_dim=300, hidden_dim=0, out_dim=300, *, key=None):
        if key is None:
            key = jax.random.PRNGKey(0)
        self.inp_dim = inp_dim
        self.hidden_dim = hidden_dim
        self.out_dim = out_dim

        def init_linear(k, fan_in, fan_out):
            # torch.nn.Linear default init: U(-1/sqrt(fan_in), 1/sqrt(fan_in)).
            kw, kb = jax.random.split(k)
            bound = 1.0 / jnp.sqrt(float(fan_in))
            w = jax.random.uniform(kw, (fan_in, fan_out), jnp.float32,
                                   -bound, bound).astype(jnp.bfloat16)
            b = jax.random.uniform(kb, (fan_out,), jnp.float32,
                                   -bound, bound).reshape(1, fan_out)
            return w, b

        if hidden_dim:
            k1, k2 = jax.random.split(key)
            self.w1, self.b1 = init_linear(k1, inp_dim, hidden_dim)
            self.w2, self.b2 = init_linear(k2, hidden_dim, out_dim)
        else:
            self.w1, self.b1 = init_linear(key, inp_dim, out_dim)
            self.w2 = self.b2 = None

        # --- derive the max batch tile from a VMEM budget (not a fixed cap) --
        d_h = hidden_dim or 0
        if hidden_dim:
            resident = 2 * (2 * (inp_dim * d_h + d_h * out_dim)      # bf16 w, 2 bufs
                            + 4 * (d_h + out_dim))                   # f32 biases
        else:
            resident = 2 * (2 * inp_dim * out_dim + 4 * out_dim)
        # Streamed bytes / batch row: f32 x + f32 out (double-buffered) plus
        # the f32 hidden intermediate and slack for compiler temps.
        per_row = 4 * (2 * inp_dim + 2 * out_dim + 2 * d_h)
        avail = max(_VMEM_BUDGET - resident, per_row * _SUBLANE)
        cap = (avail // per_row) // _SUBLANE * _SUBLANE
        self._tb_cap = max(_SUBLANE, min(_MAX_BATCH_TILE, cap))

    def _pick_batch_tile(self, batch):
        n = max(1, _cdiv(batch, self._tb_cap))
        if batch >= 2 * _SUBLANE:
            n = max(n, 2)      # keep both v7x TensorCores busy when possible
        return _round_up(_cdiv(batch, n), _SUBLANE)

    def __call__(self, x):
        tb = self._pick_batch_tile(x.shape[0])
        if self.hidden_dim:
            return _fused_mlp(x, self.w1, self.b1, self.w2, self.b2,
                              batch_tile=tb)
        return _dense_relu(x, self.w1, self.b1, batch_tile=tb)


# ---------------------------------------------------------------------------
# Self-test
# ---------------------------------------------------------------------------

if __name__ == "__main__":
    key = jax.random.PRNGKey(0)
    k_params, k_params2, k_x = jax.random.split(key, 3)

    batch, inp_dim, hidden_dim, out_dim = 8, 32, 64, 48
    x = jax.random.normal(k_x, (batch, inp_dim), dtype=jnp.float32)

    # --- two-layer (hidden_dim > 0) path: single fused kernel ---
    layer = ReLUDenseLayer(inp_dim=inp_dim, hidden_dim=hidden_dim,
                           out_dim=out_dim, key=k_params)
    out = jax.block_until_ready(layer(x))
    assert out.shape == (batch, out_dim)

    # Reference replicating the kernel math (bf16 operands, f32 accumulate).
    h_ref = jnp.maximum(
        jnp.dot(x.astype(jnp.bfloat16), layer.w1,
                preferred_element_type=jnp.float32) + layer.b1, 0.0)
    ref = jnp.maximum(
        jnp.dot(h_ref.astype(jnp.bfloat16), layer.w2,
                preferred_element_type=jnp.float32) + layer.b2, 0.0)
    assert jnp.allclose(out, ref, atol=1e-4, rtol=1e-4), \
        float(jnp.max(jnp.abs(out - ref)))

    # Loose sanity check against the full-f32 math (bf16 rounding only).
    h_f32 = jnp.maximum(x @ layer.w1.astype(jnp.float32) + layer.b1, 0.0)
    ref_f32 = jnp.maximum(h_f32 @ layer.w2.astype(jnp.float32) + layer.b2, 0.0)
    assert jnp.allclose(out, ref_f32, atol=3e-2, rtol=3e-2)

    # --- single-layer (hidden_dim == 0) path ---
    layer1 = ReLUDenseLayer(inp_dim=inp_dim, hidden_dim=0, out_dim=out_dim,
                            key=k_params2)
    out1 = jax.block_until_ready(layer1(x))
    assert out1.shape == (batch, out_dim)
    ref1 = jnp.maximum(
        jnp.dot(x.astype(jnp.bfloat16), layer1.w1,
                preferred_element_type=jnp.float32) + layer1.b1, 0.0)
    assert jnp.allclose(out1, ref1, atol=1e-4, rtol=1e-4)

    print("KERNEL_OK")
</pallas_src>

<mosaic_0001>
module attributes {stable_mosaic.version = 11 : i64} {
  func.func @_fused_mlp_kernel(%arg0: i32, %arg1: memref<8x32xf32, #tpu.memory_space<vmem>>, %arg2: memref<32x64xbf16, #tpu.memory_space<vmem>>, %arg3: memref<1x64xf32, #tpu.memory_space<vmem>>, %arg4: memref<64x48xbf16, #tpu.memory_space<vmem>>, %arg5: memref<1x48xf32, #tpu.memory_space<vmem>>, %arg6: memref<8x48xf32, #tpu.memory_space<vmem>>) attributes {dimension_semantics = [#tpu.dimension_semantics<parallel>], iteration_bounds = array<i64: 1>, scalar_prefetch = 0 : i64, scratch_operands = 0 : i64, tpu.core_type = #tpu.core_type<tc>, window_params = [{transform_indices = @transform_0, window_bounds = array<i64: 8, 32>}, {pipeline_mode = #tpu.pipeline_mode<synchronous>, transform_indices = @transform_1, window_bounds = array<i64: 32, 64>}, {pipeline_mode = #tpu.pipeline_mode<synchronous>, transform_indices = @transform_2, window_bounds = array<i64: 1, 64>}, {pipeline_mode = #tpu.pipeline_mode<synchronous>, transform_indices = @transform_3, window_bounds = array<i64: 64, 48>}, {pipeline_mode = #tpu.pipeline_mode<synchronous>, transform_indices = @transform_4, window_bounds = array<i64: 1, 48>}, {transform_indices = @transform_5, window_bounds = array<i64: 8, 48>}]} {
    %c0 = arith.constant 0 : index
    %c0_0 = arith.constant 0 : index
    %0 = vector.load %arg1[%c0, %c0_0] : memref<8x32xf32, #tpu.memory_space<vmem>>, vector<8x32xf32>
    %1 = arith.truncf %0 : vector<8x32xf32> to vector<8x32xbf16>
    %c0_1 = arith.constant 0 : index
    %c0_2 = arith.constant 0 : index
    %2 = vector.load %arg2[%c0_1, %c0_2] : memref<32x64xbf16, #tpu.memory_space<vmem>>, vector<32x64xbf16>
    %cst = arith.constant dense<0.000000e+00> : vector<8x64xf32>
    %3 = tpu.matmul %1, %2, %cst {dimension_numbers = #tpu.dot_dimension_numbers<[1], [0], [0], [1], [0, 0, 1, 1], [], []>} : vector<8x32xbf16>, vector<32x64xbf16>, vector<8x64xf32> -> vector<8x64xf32>
    %c0_3 = arith.constant 0 : index
    %c0_4 = arith.constant 0 : index
    %4 = vector.load %arg3[%c0_3, %c0_4] : memref<1x64xf32, #tpu.memory_space<vmem>>, vector<1x64xf32>
    %5 = vector.broadcast %4 : vector<1x64xf32> to vector<8x64xf32>
    %6 = arith.addf %3, %5 : vector<8x64xf32>
    %cst_5 = arith.constant 0.000000e+00 : f32
    %7 = vector.broadcast %cst_5 : f32 to vector<8x64xf32>
    %8 = arith.maximumf %6, %7 : vector<8x64xf32>
    %9 = arith.truncf %8 : vector<8x64xf32> to vector<8x64xbf16>
    %c0_6 = arith.constant 0 : index
    %c0_7 = arith.constant 0 : index
    %10 = vector.load %arg4[%c0_6, %c0_7] : memref<64x48xbf16, #tpu.memory_space<vmem>>, vector<64x48xbf16>
    %cst_8 = arith.constant dense<0.000000e+00> : vector<8x48xf32>
    %11 = tpu.matmul %9, %10, %cst_8 {dimension_numbers = #tpu.dot_dimension_numbers<[1], [0], [0], [1], [0, 0, 1, 1], [], []>} : vector<8x64xbf16>, vector<64x48xbf16>, vector<8x48xf32> -> vector<8x48xf32>
    %c0_9 = arith.constant 0 : index
    %c0_10 = arith.constant 0 : index
    %12 = vector.load %arg5[%c0_9, %c0_10] : memref<1x48xf32, #tpu.memory_space<vmem>>, vector<1x48xf32>
    %13 = vector.broadcast %12 : vector<1x48xf32> to vector<8x48xf32>
    %14 = arith.addf %11, %13 : vector<8x48xf32>
    %cst_11 = arith.constant 0.000000e+00 : f32
    %15 = vector.broadcast %cst_11 : f32 to vector<8x48xf32>
    %16 = arith.maximumf %14, %15 : vector<8x48xf32>
    %c0_12 = arith.constant 0 : index
    %c0_13 = arith.constant 0 : index
    %17 = vector.load %arg6[%c0_12, %c0_13] : memref<8x48xf32, #tpu.memory_space<vmem>>, vector<8x48xf32>
    tpu.vector_store %arg6[%c0_12, %c0_13], %16 {strides = array<i32>} : memref<8x48xf32, #tpu.memory_space<vmem>>, vector<8x48xf32>,
    return
  }
  func.func @transform_0(%arg0: i32) -> (i32, i32) {
    %c0_i32 = arith.constant 0 : i32
    %c0_i32_0 = arith.constant 0 : i32
    return %arg0, %c0_i32 : i32, i32
  }
  func.func @transform_1(%arg0: i32) -> (i32, i32) {
    %c0_i32 = arith.constant 0 : i32
    %c0_i32_0 = arith.constant 0 : i32
    %c0_i32_1 = arith.constant 0 : i32
    return %c0_i32, %c0_i32_0 : i32, i32
  }
  func.func @transform_2(%arg0: i32) -> (i32, i32) {
    %c0_i32 = arith.constant 0 : i32
    %c0_i32_0 = arith.constant 0 : i32
    %c0_i32_1 = arith.constant 0 : i32
    return %c0_i32, %c0_i32_0 : i32, i32
  }
  func.func @transform_3(%arg0: i32) -> (i32, i32) {
    %c0_i32 = arith.constant 0 : i32
    %c0_i32_0 = arith.constant 0 : i32
    %c0_i32_1 = arith.constant 0 : i32
    return %c0_i32, %c0_i32_0 : i32, i32
  }
  func.func @transform_4(%arg0: i32) -> (i32, i32) {
    %c0_i32 = arith.constant 0 : i32
    %c0_i32_0 = arith.constant 0 : i32
    %c0_i32_1 = arith.constant 0 : i32
    return %c0_i32, %c0_i32_0 : i32, i32
  }
  func.func @transform_5(%arg0: i32) -> (i32, i32) {
    %c0_i32 = arith.constant 0 : i32
    %c0_i32_0 = arith.constant 0 : i32
    return %arg0, %c0_i32 : i32, i32
  }
}

</mosaic_0001>

<bundles_post_ra>
// kernel: tpu_custom_call.1
= control target key start
LH: loop header
LB: loop body
LE: loop exit
PB: predicated region body
PF: predicated region fallthrough
CT: control target
= control target key end

     0   :  { %s257_s0 = inlined_call_operand.vmem [shape: f32[8,32], index: 0, kind: input, shape index: {}]   ;;  %s258_s1 = inlined_call_operand.vmem [shape: bf16[32,64], index: 1, kind: input, shape index: {}]   ;;  %s259_s2 = inlined_call_operand.vmem [shape: f32[1,64], index: 2, kind: input, shape index: {}]   ;;  %s260_s3 = inlined_call_operand.vmem [shape: bf16[64,48], index: 3, kind: input, shape index: {}]   ;;  %s261_s4 = inlined_call_operand.vmem [shape: f32[1,48], index: 4, kind: input, shape index: {}]   ;;  %s262_s5 = inlined_call_operand.hbm [shape: f32[8,48], index: 5, kind: output, shape index: {}]  }
   0x1   :  { %v162_v0 = vld [vmem:[%s258_s1 + $0x8] sm:$0xff]  ;;  %v161_v1 = vld [vmem:[%s258_s1] sm:$0xff]  ;;  %v166_v2 = vld [vmem:[%s260_s3 + $0x18] sm:$0xff] }
   0x2   :  { %54 = vmatpush.bf16.msra.mxu0 %v162_v0  ;;  %v22_v3 = vld [vmem:[%s257_s0] sm:$0xff] }
   0x3   :  { %10 = vsyncpa [#allocation3], 0  ;;  %107 = vmatpush.bf16.msra.mxu1 %v166_v2  ;;  %v165_v4 = vld [vmem:[%s260_s3 + $0x10] sm:$0xff]  ;;  %v23_v5 = vpack.c.bf16 %v22_v3, %v22_v3  ;;  %vm44_vm0 = vcmask 261120   ;;  %v164_v6 = vld [vmem:[%s260_s3 + $0x8] sm:$0xff]  ;;  %vm99_vm1 = vcmask 523264  }
   0x4   :  { %v163_v7 = vld [vmem:[%s260_s3] sm:$0xff]  ;;  %s196_s9 = smov [#allocation2]   ;;  %s126_s12 = sshll.u32 %s262_s5, 4  ;;  %vm117_vm2 = vcmask 392192   ;;  %s127_s12 = int_to_ptr.hbm [resolvable:$true] %s126_s12 }
   0x5   :  { %v168_v8 = vld [vmem:[%s259_s2] ss:$0 sm:$0xff]  ;;  %s124_s10 = sshll.u32 %s196_s9, 4  ;;  %s125_s10 = int_to_ptr.vmem [resolvable:$true] %s124_s10 }
   0x6   :  { %55 = vmatpush.bf16.msra.mxu0 %v161_v1  ;;  %v169_v14 = vld [vmem:[%s261_s4] ss:$0 sm:$0xff] }
   0x7   :  { %108 = vmatpush.bf16.msra.mxu1 %v165_v4 }
   0x9   :  { %143 = vmatmul.msk.bf16.vlgmr.msra.gmra.mxu0 %vm44_vm0, %v23_v5 }
   0xb   :  { %109 = vmatpush.bf16.msra.mxu1 %v164_v6 }
   0xf   :  { %110 = vmatpush.bf16.msra.mxu1 %v163_v7 }
  0x86   :  { %v57_v9 = vpop.f32.mrf.mxu0 }
  0x87   :  { %v58_v10 = vadd.f32 %v168_v8, %v57_v9 }
  0x89   :  { %v61_v11 = vmax.f32 %v58_v10, 0.0 }
  0x8b   :  { %v62_v12 = vpack.c.bf16 %v61_v11, %v61_v11 }
  0x8d   :  { %160 = vmatmul.msk.bf16.vlgmr.msra.gmra.mxu1 %vm99_vm1, %v62_v12 }
  0x8e   :  { %v59_v13 = vpop.f32.mrf.mxu0 }
 0x10a   :  { %v112_v15 = vpop.f32.mrf.mxu1 }
 0x10b   :  { %v113_v16 = vadd.f32 %v169_v14, %v112_v15 }
 0x10d   :  { %v116_v17 = vmax.f32 %v113_v16, 0.0 }
 0x10f   :  { %118 = vst.msk [vmem:[#allocation2] sm:$0xff] %vm117_vm2, %v116_v17 }
 0x110   :  { %129 = dma.vmem_to_hbm [thread:$0]  %s125_s10, 128, %s127_s12, [#allocation3]  }
 0x112   :  { %v114_v18 = vpop.f32.mrf.mxu1 }
 0x113   :  { %194 = dma.done.wait [#allocation3], 128  }
 0x114   :  { %195 = vsyncadd [#allocation3], 4294967168 }
 0x115   :  { %134 = vsyncpa [#allocation3], 1 }

</bundles_post_ra>
